<compile_context>
chip_gen: v7x
topology: tpu7x:2x2x1
jax: 0.10.0
libtpu: 0.0.40
codegen_flags: <defaults>
</compile_context>

<pallas_src>
import functools

import jax
import jax.numpy as jnp
from jax.experimental import pallas as pl
from jax.experimental.pallas import tpu as pltpu


def _round_up(x, m):
    return ((x + m - 1) // m) * m


# ---------------------------------------------------------------------------
# Pallas kernel: out = act(A @ W + b)   (A, W bf16 on the MXU, f32 accumulation)
# ---------------------------------------------------------------------------
def _gemm_bias_act_kernel(a_ref, w_ref, b_ref, o_ref, *, activation):
    acc = jnp.dot(a_ref[...], w_ref[...], preferred_element_type=jnp.float32)
    acc = acc + b_ref[...]                     # (1, Np) broadcasts over rows
    if activation == "relu":
        acc = jnp.maximum(acc, 0.0)
    elif activation == "tanh":
        acc = jnp.tanh(acc)
    o_ref[...] = acc.astype(o_ref.dtype)


def _choose_tm(M, Kp, Np, out_itemsize, w_bytes, vmem_budget=10 << 20):
    """VMEM- and tail-aware M tile: double-buffered A(bf16)+out tiles + resident W under budget,
    last tile nearly full, and >=2-4 grid steps when M allows (v7x megacore + pipelining)."""
    per_row = 2 * (Kp * 2) + 2 * (Np * out_itemsize)      # dbl-buffered A + out bytes per row
    tm_vmem = max(16, ((vmem_budget - 2 * w_bytes) // per_row) // 16 * 16)
    tm_cap = max(16, min(256, tm_vmem))
    nt = max(pl.cdiv(M, tm_cap), min(4, pl.cdiv(M, 16)))
    tm = min(tm_cap, _round_up(pl.cdiv(M, nt), 16))
    return tm, nt


def gemm_bias_act(a, layer, *, activation, out_dtype):
    """a: (M, K).  layer: {'w': (Kp,Np) bf16, 'b': (1,Np) f32, 'k': K, 'n': N}.
    Returns act(a @ w + b) as (M, N) in out_dtype."""
    M, K = a.shape
    Kp, Np = layer["w"].shape
    assert K == layer["k"], (K, layer["k"])

    out_itemsize = jnp.dtype(out_dtype).itemsize
    tm, nt = _choose_tm(M, Kp, Np, out_itemsize, Kp * Np * 2)
    Mp = nt * tm

    # single fused cast+pad (no-op when already bf16 / aligned, e.g. c=64 conv2)
    a_p = jnp.pad(a.astype(jnp.bfloat16), ((0, Mp - M), (0, Kp - K)))

    out = pl.pallas_call(
        functools.partial(_gemm_bias_act_kernel, activation=activation),
        out_shape=jax.ShapeDtypeStruct((Mp, Np), out_dtype),
        grid=(nt,),
        in_specs=[
            pl.BlockSpec((tm, Kp), lambda i: (i, 0)),   # A: one M tile per grid step
            pl.BlockSpec((Kp, Np), lambda i: (0, 0)),   # W: VMEM-resident across M tiles
            pl.BlockSpec((1, Np), lambda i: (0, 0)),    # bias row: resident
        ],
        out_specs=pl.BlockSpec((tm, Np), lambda i: (i, 0)),
        compiler_params=pltpu.CompilerParams(
            dimension_semantics=("parallel",),
            vmem_limit_bytes=32 * 1024 * 1024,
        ),
    )(a_p, layer["w"], layer["b"])
    return out[:M, : layer["n"]]


# ---------------------------------------------------------------------------
# One-time parameter preparation (permute / parity-pack / pad / cast — not in the hot path)
# ---------------------------------------------------------------------------
def _prep_gemm_layer(w_mat, b_vec):
    K, N = w_mat.shape
    Kp, Np = _round_up(K, 128), _round_up(N, 128)
    return {
        "w": jnp.pad(w_mat.astype(jnp.bfloat16), ((0, Kp - K), (0, Np - N))),
        "b": jnp.pad(b_vec.astype(jnp.float32), (0, Np - N)).reshape(1, Np),
        "k": K,
        "n": N,
    }


# Sub-pixel decomposition of ConvTranspose2d(k=4, s=2, p=1).
# For output row oh = 2q + ph, the contributing taps (relative to the padded 3-row window
# starting at padded row q) are:  ph=0 -> (u=0, kh=3), (u=1, kh=1);  ph=1 -> (u=1, kh=2), (u=2, kh=0).
_TAPS = {0: ((0, 3), (1, 1)), 1: ((1, 2), (2, 0))}


def _prep_convT_parity(w_t, b):
    """w_t: PyTorch ConvTranspose2d weight (Cin, Cout, 4, 4) -> GEMM weight (9*Cin, 4*Cout)
    over a 3x3 input window, with the 4 output parities packed into the columns."""
    Cin, Cout = w_t.shape[0], w_t.shape[1]
    wg = jnp.zeros((3, 3, Cin, 2, 2, Cout), jnp.float32)
    for ph in (0, 1):
        for (u, kh) in _TAPS[ph]:
            for pw in (0, 1):
                for (v, kw) in _TAPS[pw]:
                    wg = wg.at[u, v, :, ph, pw, :].set(w_t[:, :, kh, kw])
    w_mat = wg.reshape(9 * Cin, 4 * Cout)                     # rows: (u, v, ci); cols: (ph, pw, co)
    b_vec = jnp.broadcast_to(b.reshape(1, 1, Cout), (2, 2, Cout)).reshape(4 * Cout)
    return _prep_gemm_layer(w_mat, b_vec)


def prepare_decoder_params(params, *, capacity):
    c = capacity
    latent = params["fc_w"].shape[1]

    # fc: PyTorch computes y = z @ W.T + b then views y as NCHW (2c, 7, 7).
    # Permute output features once so the fc kernel output is already NHWC-flattened.
    w_fc = params["fc_w"].reshape(2 * c, 7, 7, latent).transpose(1, 2, 0, 3)
    w_fc = w_fc.reshape(7 * 7 * 2 * c, latent)
    b_fc = params["fc_b"].reshape(2 * c, 7, 7).transpose(1, 2, 0).reshape(-1)

    return {
        "c": c,
        "fc": _prep_gemm_layer(w_fc.T, b_fc),                 # (latent, 49*2c)
        "conv2": _prep_convT_parity(params["conv2_w"], params["conv2_b"]),
        "conv1": _prep_convT_parity(params["conv1_w"], params["conv1_b"]),
    }


# ---------------------------------------------------------------------------
# ConvTranspose2d (k=4, s=2, p=1) via parity decomposition: 3x3-window im2col (no zero
# insertion, no structural zeros) + one fused Pallas GEMM (N = 4*Cout) + pixel shuffle.
# ---------------------------------------------------------------------------
def _im2col3x3(x):
    """x: (N, H, W, C) -> (N*H*W, 9*C), column order (u, v, c)."""
    N, H, W, C = x.shape
    xp = jnp.pad(x, ((0, 0), (1, 1), (1, 1), (0, 0)))
    cols = [xp[:, u:u + H, v:v + W, :] for u in range(3) for v in range(3)]
    return jnp.concatenate(cols, axis=-1).reshape(N * H * W, 9 * C)


def conv_transpose_parity(x, layer, *, activation, out_dtype):
    """x: (N, H, W, Cin) -> (N, 2H, 2W, Cout)."""
    N, H, W, _ = x.shape
    Cout = layer["n"] // 4
    a = _im2col3x3(x)
    y = gemm_bias_act(a, layer, activation=activation, out_dtype=out_dtype)  # (N*H*W, 4*Cout)
    y = y.reshape(N, H, W, 2, 2, Cout)                        # (n, q, r, ph, pw, co)
    y = jnp.transpose(y, (0, 1, 3, 2, 4, 5)).reshape(N, 2 * H, 2 * W, Cout)  # pixel shuffle
    return y


# ---------------------------------------------------------------------------
# Decoder forward (fc -> view -> convT2+relu -> convT1+tanh)
# ---------------------------------------------------------------------------
def decoder_forward(prepared, z):
    """z: (N, latent) f32 -> (N, 1, 28, 28) f32."""
    c = prepared["c"]
    n = z.shape[0]
    h = gemm_bias_act(z, prepared["fc"], activation=None, out_dtype=jnp.bfloat16)   # (N, 49*2c)
    h = h.reshape(n, 7, 7, 2 * c)                                                   # NHWC view
    h = conv_transpose_parity(h, prepared["conv2"], activation="relu",
                              out_dtype=jnp.bfloat16)                               # (N,14,14,c)
    h = conv_transpose_parity(h, prepared["conv1"], activation="tanh",
                              out_dtype=jnp.float32)                                # (N,28,28,1)
    return jnp.transpose(h, (0, 3, 1, 2))                                           # NCHW


# ---------------------------------------------------------------------------
# Pure-JAX reference (mirrors the PyTorch module exactly, NCHW) for self-check
# ---------------------------------------------------------------------------
def decoder_reference(params, z, *, capacity):
    c = capacity
    h = z @ params["fc_w"].T + params["fc_b"]
    h = h.reshape(z.shape[0], 2 * c, 7, 7)

    def convT(x, w_t, b):
        k = w_t.shape[2]
        w_conv = jnp.transpose(w_t[:, :, ::-1, ::-1], (1, 0, 2, 3))   # (Cout, Cin, kh, kw)
        out = jax.lax.conv_general_dilated(
            x, w_conv, window_strides=(1, 1),
            padding=((k - 1 - 1, k - 1 - 1), (k - 1 - 1, k - 1 - 1)),
            lhs_dilation=(2, 2),
            dimension_numbers=("NCHW", "OIHW", "NCHW"))
        return out + b.reshape(1, -1, 1, 1)

    h = jax.nn.relu(convT(h, params["conv2_w"], params["conv2_b"]))
    h = jnp.tanh(convT(h, params["conv1_w"], params["conv1_b"]))
    return h


# ---------------------------------------------------------------------------
# Parameter init (PyTorch layouts)
# ---------------------------------------------------------------------------
def init_decoder_params(key, capacity=8, latent_dim=10):
    c = capacity
    k = jax.random.split(key, 6)
    return {
        # nn.Linear(latent, 2c*7*7): weight (out, in), bias (out,)
        "fc_w": jax.random.normal(k[0], (2 * c * 7 * 7, latent_dim), jnp.float32) * 0.05,
        "fc_b": jax.random.normal(k[1], (2 * c * 7 * 7,), jnp.float32) * 0.05,
        # nn.ConvTranspose2d weight: (in_channels, out_channels, kh, kw)
        "conv2_w": jax.random.normal(k[2], (2 * c, c, 4, 4), jnp.float32) * 0.05,
        "conv2_b": jax.random.normal(k[3], (c,), jnp.float32) * 0.05,
        "conv1_w": jax.random.normal(k[4], (c, 1, 4, 4), jnp.float32) * 0.1,
        "conv1_b": jax.random.normal(k[5], (1,), jnp.float32) * 0.1,
    }


if __name__ == "__main__":
    capacity = 8        # small capacity for the synthetic test (module default is 64)
    latent_dim = 10
    batch = 2

    key = jax.random.PRNGKey(0)
    pkey, zkey = jax.random.split(key)
    params = init_decoder_params(pkey, capacity=capacity, latent_dim=latent_dim)
    prepared = prepare_decoder_params(params, capacity=capacity)

    z = jax.random.normal(zkey, (batch, latent_dim), jnp.float32)

    fwd = jax.jit(lambda zz: decoder_forward(prepared, zz))
    out = jax.block_until_ready(fwd(z))

    assert out.shape == (batch, 1, 28, 28), out.shape
    assert out.dtype == jnp.float32

    # correctness self-check vs pure-JAX reference (bf16 MXU operands / bf16 intermediates)
    ref = jax.block_until_ready(decoder_reference(params, z, capacity=capacity))
    max_err = float(jnp.max(jnp.abs(out - ref)))
    assert max_err < 3e-2, f"mismatch vs reference: max abs err = {max_err}"

    print("KERNEL_OK")
</pallas_src>

<mosaic_0001>
module attributes {stable_mosaic.version = 11 : i64} {
  func.func @_gemm_bias_act_kernel(%arg0: i32, %arg1: memref<16x128xbf16, #tpu.memory_space<vmem>>, %arg2: memref<128x896xbf16, #tpu.memory_space<vmem>>, %arg3: memref<1x896xf32, #tpu.memory_space<vmem>>, %arg4: memref<16x896xbf16, #tpu.memory_space<vmem>>) attributes {dimension_semantics = [#tpu.dimension_semantics<parallel>], iteration_bounds = array<i64: 1>, scalar_prefetch = 0 : i64, scratch_operands = 0 : i64, tpu.core_type = #tpu.core_type<tc>, window_params = [{transform_indices = @transform_0, window_bounds = array<i64: 16, 128>}, {pipeline_mode = #tpu.pipeline_mode<synchronous>, transform_indices = @transform_1, window_bounds = array<i64: 128, 896>}, {pipeline_mode = #tpu.pipeline_mode<synchronous>, transform_indices = @transform_2, window_bounds = array<i64: 1, 896>}, {transform_indices = @transform_3, window_bounds = array<i64: 16, 896>}]} {
    %c0 = arith.constant 0 : index
    %c0_0 = arith.constant 0 : index
    %0 = vector.load %arg1[%c0, %c0_0] : memref<16x128xbf16, #tpu.memory_space<vmem>>, vector<16x128xbf16>
    %c0_1 = arith.constant 0 : index
    %c0_2 = arith.constant 0 : index
    %1 = vector.load %arg2[%c0_1, %c0_2] : memref<128x896xbf16, #tpu.memory_space<vmem>>, vector<128x896xbf16>
    %cst = arith.constant dense<0.000000e+00> : vector<16x896xf32>
    %2 = tpu.matmul %0, %1, %cst {dimension_numbers = #tpu.dot_dimension_numbers<[1], [0], [0], [1], [0, 0, 1, 1], [], []>} : vector<16x128xbf16>, vector<128x896xbf16>, vector<16x896xf32> -> vector<16x896xf32>
    %c0_3 = arith.constant 0 : index
    %c0_4 = arith.constant 0 : index
    %3 = vector.load %arg3[%c0_3, %c0_4] : memref<1x896xf32, #tpu.memory_space<vmem>>, vector<1x896xf32>
    %4 = vector.broadcast %3 : vector<1x896xf32> to vector<16x896xf32>
    %5 = arith.addf %2, %4 : vector<16x896xf32>
    %6 = arith.truncf %5 : vector<16x896xf32> to vector<16x896xbf16>
    %c0_5 = arith.constant 0 : index
    %c0_6 = arith.constant 0 : index
    %7 = vector.load %arg4[%c0_5, %c0_6] : memref<16x896xbf16, #tpu.memory_space<vmem>>, vector<16x896xbf16>
    tpu.vector_store %arg4[%c0_5, %c0_6], %6 {strides = array<i32>} : memref<16x896xbf16, #tpu.memory_space<vmem>>, vector<16x896xbf16>,
    return
  }
  func.func @transform_0(%arg0: i32) -> (i32, i32) {
    %c0_i32 = arith.constant 0 : i32
    %c0_i32_0 = arith.constant 0 : i32
    return %arg0, %c0_i32 : i32, i32
  }
  func.func @transform_1(%arg0: i32) -> (i32, i32) {
    %c0_i32 = arith.constant 0 : i32
    %c0_i32_0 = arith.constant 0 : i32
    %c0_i32_1 = arith.constant 0 : i32
    return %c0_i32, %c0_i32_0 : i32, i32
  }
  func.func @transform_2(%arg0: i32) -> (i32, i32) {
    %c0_i32 = arith.constant 0 : i32
    %c0_i32_0 = arith.constant 0 : i32
    %c0_i32_1 = arith.constant 0 : i32
    return %c0_i32, %c0_i32_0 : i32, i32
  }
  func.func @transform_3(%arg0: i32) -> (i32, i32) {
    %c0_i32 = arith.constant 0 : i32
    %c0_i32_0 = arith.constant 0 : i32
    return %arg0, %c0_i32 : i32, i32
  }
}

module attributes {stable_mosaic.version = 11 : i64} {
  func.func @_gemm_bias_act_kernel(%arg0: i32, %arg1: memref<32x256xbf16, #tpu.memory_space<vmem>>, %arg2: memref<256x128xbf16, #tpu.memory_space<vmem>>, %arg3: memref<1x128xf32, #tpu.memory_space<vmem>>, %arg4: memref<32x128xbf16, #tpu.memory_space<vmem>>) attributes {dimension_semantics = [#tpu.dimension_semantics<parallel>], iteration_bounds = array<i64: 4>, scalar_prefetch = 0 : i64, scratch_operands = 0 : i64, tpu.core_type = #tpu.core_type<tc>, window_params = [{transform_indices = @transform_0, window_bounds = array<i64: 32, 256>}, {pipeline_mode = #tpu.pipeline_mode<synchronous>, transform_indices = @transform_1, window_bounds = array<i64: 256, 128>}, {pipeline_mode = #tpu.pipeline_mode<synchronous>, transform_indices = @transform_2, window_bounds = array<i64: 1, 128>}, {transform_indices = @transform_3, window_bounds = array<i64: 32, 128>}]} {
    %c0 = arith.constant 0 : index
    %c0_0 = arith.constant 0 : index
    %0 = vector.load %arg1[%c0, %c0_0] : memref<32x256xbf16, #tpu.memory_space<vmem>>, vector<32x256xbf16>
    %c0_1 = arith.constant 0 : index
    %c0_2 = arith.constant 0 : index
    %1 = vector.load %arg2[%c0_1, %c0_2] : memref<256x128xbf16, #tpu.memory_space<vmem>>, vector<256x128xbf16>
    %cst = arith.constant dense<0.000000e+00> : vector<32x128xf32>
    %2 = tpu.matmul %0, %1, %cst {dimension_numbers = #tpu.dot_dimension_numbers<[1], [0], [0], [1], [0, 0, 1, 1], [], []>} : vector<32x256xbf16>, vector<256x128xbf16>, vector<32x128xf32> -> vector<32x128xf32>
    %c0_3 = arith.constant 0 : index
    %c0_4 = arith.constant 0 : index
    %3 = vector.load %arg3[%c0_3, %c0_4] : memref<1x128xf32, #tpu.memory_space<vmem>>, vector<1x128xf32>
    %4 = vector.broadcast %3 : vector<1x128xf32> to vector<32x128xf32>
    %5 = arith.addf %2, %4 : vector<32x128xf32>
    %cst_5 = arith.constant 0.000000e+00 : f32
    %6 = vector.broadcast %cst_5 : f32 to vector<32x128xf32>
    %7 = arith.maximumf %5, %6 : vector<32x128xf32>
    %8 = arith.truncf %7 : vector<32x128xf32> to vector<32x128xbf16>
    %c0_6 = arith.constant 0 : index
    %c0_7 = arith.constant 0 : index
    %9 = vector.load %arg4[%c0_6, %c0_7] : memref<32x128xbf16, #tpu.memory_space<vmem>>, vector<32x128xbf16>
    tpu.vector_store %arg4[%c0_6, %c0_7], %8 {strides = array<i32>} : memref<32x128xbf16, #tpu.memory_space<vmem>>, vector<32x128xbf16>,
    return
  }
  func.func @transform_0(%arg0: i32) -> (i32, i32) {
    %c0_i32 = arith.constant 0 : i32
    %c0_i32_0 = arith.constant 0 : i32
    return %arg0, %c0_i32 : i32, i32
  }
  func.func @transform_1(%arg0: i32) -> (i32, i32) {
    %c0_i32 = arith.constant 0 : i32
    %c0_i32_0 = arith.constant 0 : i32
    %c0_i32_1 = arith.constant 0 : i32
    return %c0_i32, %c0_i32_0 : i32, i32
  }
  func.func @transform_2(%arg0: i32) -> (i32, i32) {
    %c0_i32 = arith.constant 0 : i32
    %c0_i32_0 = arith.constant 0 : i32
    %c0_i32_1 = arith.constant 0 : i32
    return %c0_i32, %c0_i32_0 : i32, i32
  }
  func.func @transform_3(%arg0: i32) -> (i32, i32) {
    %c0_i32 = arith.constant 0 : i32
    %c0_i32_0 = arith.constant 0 : i32
    return %arg0, %c0_i32 : i32, i32
  }
}

module attributes {stable_mosaic.version = 11 : i64} {
  func.func @_gemm_bias_act_kernel(%arg0: i32, %arg1: memref<112x128xbf16, #tpu.memory_space<vmem>>, %arg2: memref<128x128xbf16, #tpu.memory_space<vmem>>, %arg3: memref<1x128xf32, #tpu.memory_space<vmem>>, %arg4: memref<112x128xf32, #tpu.memory_space<vmem>>) attributes {dimension_semantics = [#tpu.dimension_semantics<parallel>], iteration_bounds = array<i64: 4>, scalar_prefetch = 0 : i64, scratch_operands = 0 : i64, tpu.core_type = #tpu.core_type<tc>, window_params = [{transform_indices = @transform_0, window_bounds = array<i64: 112, 128>}, {pipeline_mode = #tpu.pipeline_mode<synchronous>, transform_indices = @transform_1, window_bounds = array<i64: 128, 128>}, {pipeline_mode = #tpu.pipeline_mode<synchronous>, transform_indices = @transform_2, window_bounds = array<i64: 1, 128>}, {transform_indices = @transform_3, window_bounds = array<i64: 112, 128>}]} {
    %c0 = arith.constant 0 : index
    %c0_0 = arith.constant 0 : index
    %0 = vector.load %arg1[%c0, %c0_0] : memref<112x128xbf16, #tpu.memory_space<vmem>>, vector<112x128xbf16>
    %c0_1 = arith.constant 0 : index
    %c0_2 = arith.constant 0 : index
    %1 = vector.load %arg2[%c0_1, %c0_2] : memref<128x128xbf16, #tpu.memory_space<vmem>>, vector<128x128xbf16>
    %cst = arith.constant dense<0.000000e+00> : vector<112x128xf32>
    %2 = tpu.matmul %0, %1, %cst {dimension_numbers = #tpu.dot_dimension_numbers<[1], [0], [0], [1], [0, 0, 1, 1], [], []>} : vector<112x128xbf16>, vector<128x128xbf16>, vector<112x128xf32> -> vector<112x128xf32>
    %c0_3 = arith.constant 0 : index
    %c0_4 = arith.constant 0 : index
    %3 = vector.load %arg3[%c0_3, %c0_4] : memref<1x128xf32, #tpu.memory_space<vmem>>, vector<1x128xf32>
    %4 = vector.broadcast %3 : vector<1x128xf32> to vector<112x128xf32>
    %5 = arith.addf %2, %4 : vector<112x128xf32>
    %6 = math.tanh %5 : vector<112x128xf32>
    %c0_5 = arith.constant 0 : index
    %c0_6 = arith.constant 0 : index
    %7 = vector.load %arg4[%c0_5, %c0_6] : memref<112x128xf32, #tpu.memory_space<vmem>>, vector<112x128xf32>
    tpu.vector_store %arg4[%c0_5, %c0_6], %6 {strides = array<i32>} : memref<112x128xf32, #tpu.memory_space<vmem>>, vector<112x128xf32>,
    return
  }
  func.func @transform_0(%arg0: i32) -> (i32, i32) {
    %c0_i32 = arith.constant 0 : i32
    %c0_i32_0 = arith.constant 0 : i32
    return %arg0, %c0_i32 : i32, i32
  }
  func.func @transform_1(%arg0: i32) -> (i32, i32) {
    %c0_i32 = arith.constant 0 : i32
    %c0_i32_0 = arith.constant 0 : i32
    %c0_i32_1 = arith.constant 0 : i32
    return %c0_i32, %c0_i32_0 : i32, i32
  }
  func.func @transform_2(%arg0: i32) -> (i32, i32) {
    %c0_i32 = arith.constant 0 : i32
    %c0_i32_0 = arith.constant 0 : i32
    %c0_i32_1 = arith.constant 0 : i32
    return %c0_i32, %c0_i32_0 : i32, i32
  }
  func.func @transform_3(%arg0: i32) -> (i32, i32) {
    %c0_i32 = arith.constant 0 : i32
    %c0_i32_0 = arith.constant 0 : i32
    return %arg0, %c0_i32 : i32, i32
  }
}

</mosaic_0001>

<bundles_post_ra>
// kernel: _lambda_.3
= control target key start
LH: loop header
LB: loop body
LE: loop exit
PB: predicated region body
PF: predicated region fallthrough
CT: control target
= control target key end

     0   :  { %v824_v1 = vmov 0   ;;  %v825_v37 = vmov 0.0   ;;  %vm826_vm0 = vmmov 0   ;;  %v83_v59 = vlaneseq  ;;  %s1054_s1 = inlined_call_operand.vmem [shape: bf16[128,896], index: 1, kind: input, shape index: {}]   ;;  %s1055_s0 = inlined_call_operand.vmem [shape: bf16[16,128], index: 0, kind: input, shape index: {}]   ;;  %s1056_s2 = inlined_call_operand.vmem [shape: f32[1,896], index: 2, kind: input, shape index: {}]   ;;  %s1057_s3 = inlined_call_operand.vmem [shape: bf16[16,896], index: 3, kind: output, shape index: {}]  }
   0x1   :  { %v743_v0 = vld [vmem:[%s1054_s1 + $0x4] ss:$28 sps:$4 sm:$0xff]   ;;  %444 = vmatprep.mubr.bf16.mxu0 %v824_v1  ;;  %487 = vmatprep.mubr.bf16.mxu1 %v824_v1  ;;  %v745_v2 = vld [vmem:[%s1054_s1 + $0xc] ss:$28 sps:$4 sm:$0xff]   ;;  %v749_v5 = vld [vmem:[%s1054_s1 + $0x3c] ss:$28 sps:$4 sm:$0xff]  }
   0x2   :  { %412 = vmatprep.subr.bf16.mxu0 %v743_v0  ;;  %v747_v3 = vld [vmem:[%s1054_s1] ss:$28 sps:$4 sm:$0xff]   ;;  %v748_v4 = vld [vmem:[%s1054_s1 + $0x8] ss:$28 sps:$4 sm:$0xff]   ;;  %455 = vmatprep.subr.bf16.mxu1 %v745_v2  ;;  %v753_v7 = vld [vmem:[%s1054_s1 + $0x38] ss:$28 sps:$4 sm:$0xff]  }
   0x3   :  { %413 = vmatpush1.bf16.msra.mxu0 %v747_v3  ;;  %456 = vmatpush1.bf16.msra.mxu1 %v748_v4  ;;  %v751_v6 = vld [vmem:[%s1054_s1 + $0x44] ss:$28 sps:$4 sm:$0xff]   ;;  %v755_v9 = vld [vmem:[%s1054_s1 + $0x74] ss:$28 sps:$4 sm:$0xff]   ;;  %v757_v10 = vld [vmem:[%s1054_s1 + $0x7c] ss:$28 sps:$4 sm:$0xff]  }
   0x4   :  { %414 = vmatprep.subr.bf16.mxu0 %v749_v5  ;;  %v754_v8 = vld [vmem:[%s1054_s1 + $0x40] ss:$28 sps:$4 sm:$0xff]   ;;  %457 = vmatprep.subr.bf16.mxu1 %v751_v6  ;;  %v759_v11 = vld [vmem:[%s1054_s1 + $0x70] ss:$28 sps:$4 sm:$0xff]   ;;  %v760_v12 = vld [vmem:[%s1054_s1 + $0x78] ss:$28 sps:$4 sm:$0xff]  }
   0x5   :  { %v761_v13 = vld [vmem:[%s1054_s1 + $0xac] ss:$28 sps:$4 sm:$0xff]   ;;  %v763_v14 = vld [vmem:[%s1054_s1 + $0xb4] ss:$28 sps:$4 sm:$0xff]   ;;  %v767_v17 = vld [vmem:[%s1054_s1 + $0xe4] ss:$28 sps:$4 sm:$0xff]  }
   0x6   :  { %v765_v15 = vld [vmem:[%s1054_s1 + $0xa8] ss:$28 sps:$4 sm:$0xff]   ;;  %v766_v16 = vld [vmem:[%s1054_s1 + $0xb0] ss:$28 sps:$4 sm:$0xff]   ;;  %v771_v19 = vld [vmem:[%s1054_s1 + $0xe0] ss:$28 sps:$4 sm:$0xff]  }
   0x7   :  { %415 = vmatpush1.bf16.msra.mxu0 %v753_v7  ;;  %458 = vmatpush1.bf16.msra.mxu1 %v754_v8  ;;  %v769_v18 = vld [vmem:[%s1054_s1 + $0xec] ss:$28 sps:$4 sm:$0xff]   ;;  %v773_v21 = vld [vmem:[%s1054_s1 + $0x11c] ss:$28 sps:$4 sm:$0xff]   ;;  %v775_v22 = vld [vmem:[%s1054_s1 + $0x124] ss:$28 sps:$4 sm:$0xff]  }
   0x8   :  { %416 = vmatprep.subr.bf16.mxu0 %v755_v9  ;;  %459 = vmatprep.subr.bf16.mxu1 %v757_v10  ;;  %v772_v20 = vld [vmem:[%s1054_s1 + $0xe8] ss:$28 sps:$4 sm:$0xff]   ;;  %v777_v23 = vld [vmem:[%s1054_s1 + $0x118] ss:$28 sps:$4 sm:$0xff]   ;;  %v778_v24 = vld [vmem:[%s1054_s1 + $0x120] ss:$28 sps:$4 sm:$0xff]  }
   0x9   :  { %v779_v25 = vld [vmem:[%s1054_s1 + $0x154] ss:$28 sps:$4 sm:$0xff]   ;;  %v781_v26 = vld [vmem:[%s1054_s1 + $0x15c] ss:$28 sps:$4 sm:$0xff]   ;;  %v785_v29 = vld [vmem:[%s1054_s1 + $0x18c] ss:$28 sps:$4 sm:$0xff]  }
   0xa   :  { %v783_v27 = vld [vmem:[%s1054_s1 + $0x150] ss:$28 sps:$4 sm:$0xff]   ;;  %v784_v28 = vld [vmem:[%s1054_s1 + $0x158] ss:$28 sps:$4 sm:$0xff]   ;;  %v789_v31 = vld [vmem:[%s1054_s1 + $0x188] ss:$28 sps:$4 sm:$0xff]  }
   0xb   :  { %417 = vmatpush1.bf16.msra.mxu0 %v759_v11  ;;  %460 = vmatpush1.bf16.msra.mxu1 %v760_v12  ;;  %v787_v30 = vld [vmem:[%s1054_s1 + $0x194] ss:$28 sps:$4 sm:$0xff]   ;;  %v951_v34 = vld [vmem:[%s1055_s0] sm:$0xff]   ;;  %v798_v38 = vld [vmem:[%s1054_s1 + $0x4c] ss:$28 sps:$4 sm:$0xff]   ;;  %v84_v60 = vshrl.u32 %v83_v59, 7 }
   0xc   :  { %418 = vmatprep.subr.bf16.mxu0 %v761_v13  ;;  %461 = vmatprep.subr.bf16.mxu1 %v763_v14  ;;  %v790_v32 = vld [vmem:[%s1054_s1 + $0x190] ss:$28 sps:$4 sm:$0xff]   ;;  %v795_v36 = vld [vmem:[%s1054_s1 + $0x18] ss:$28 sps:$4 sm:$0xff]   ;;  %v796_v39 = vld [vmem:[%s1054_s1 + $0x48] ss:$28 sps:$4 sm:$0xff]  }
   0xd   :  { %v794_v33 = vld [vmem:[%s1054_s1 + $0x14] ss:$28 sps:$4 sm:$0xff]   ;;  %v802_v41 = vld [vmem:[%s1054_s1 + $0x84] ss:$28 sps:$4 sm:$0xff]   ;;  %v806_v44 = vld [vmem:[%s1054_s1 + $0xbc] ss:$28 sps:$4 sm:$0xff]  }
   0xe   :  { %v792_v35 = vld [vmem:[%s1054_s1 + $0x10] ss:$28 sps:$4 sm:$0xff]   ;;  %v800_v42 = vld [vmem:[%s1054_s1 + $0x80] ss:$28 sps:$4 sm:$0xff]   ;;  %v803_v43 = vld [vmem:[%s1054_s1 + $0x88] ss:$28 sps:$4 sm:$0xff]  }
   0xf   :  { %419 = vmatpush1.bf16.msra.mxu0 %v765_v15  ;;  %462 = vmatpush1.bf16.msra.mxu1 %v766_v16  ;;  %v799_v40 = vld [vmem:[%s1054_s1 + $0x50] ss:$28 sps:$4 sm:$0xff]   ;;  %v804_v45 = vld [vmem:[%s1054_s1 + $0xb8] ss:$28 sps:$4 sm:$0xff]   ;;  %v807_v46 = vld [vmem:[%s1054_s1 + $0xc0] ss:$28 sps:$4 sm:$0xff]  }
  0x10   :  { %420 = vmatprep.subr.bf16.mxu0 %v767_v17  ;;  %463 = vmatprep.subr.bf16.mxu1 %v769_v18  ;;  %v810_v47 = vld [vmem:[%s1054_s1 + $0xf4] ss:$28 sps:$4 sm:$0xff]   ;;  %v814_v50 = vld [vmem:[%s1054_s1 + $0x12c] ss:$28 sps:$4 sm:$0xff]   ;;  %v818_v53 = vld [vmem:[%s1054_s1 + $0x164] ss:$28 sps:$4 sm:$0xff]  }
  0x11   :  { %v808_v48 = vld [vmem:[%s1054_s1 + $0xf0] ss:$28 sps:$4 sm:$0xff]   ;;  %v811_v49 = vld [vmem:[%s1054_s1 + $0xf8] ss:$28 sps:$4 sm:$0xff]   ;;  %v812_v51 = vld [vmem:[%s1054_s1 + $0x128] ss:$28 sps:$4 sm:$0xff]  }
  0x12   :  { %v815_v52 = vld [vmem:[%s1054_s1 + $0x130] ss:$28 sps:$4 sm:$0xff]   ;;  %v816_v54 = vld [vmem:[%s1054_s1 + $0x160] ss:$28 sps:$4 sm:$0xff]   ;;  %v819_v55 = vld [vmem:[%s1054_s1 + $0x168] ss:$28 sps:$4 sm:$0xff]  }
  0x13   :  { %421 = vmatpush1.bf16.msra.mxu0 %v771_v19  ;;  %464 = vmatpush1.bf16.msra.mxu1 %v772_v20  ;;  %v822_v56 = vld [vmem:[%s1054_s1 + $0x19c] ss:$28 sps:$4 sm:$0xff]   ;;  %v85_v61 = vsub.s32 0, %v84_v60  ;;  %v93_v62 = vsub.s32 2, %v84_v60  ;;  %v81_v63 = vld [vmem:[%s1056_s2] sm:$0xff]  ;;  %v89_v0 = vsub.s32 1, %v84_v60 }
  0x14   :  { %422 = vmatprep.subr.bf16.mxu0 %v773_v21  ;;  %465 = vmatprep.subr.bf16.mxu1 %v775_v22  ;;  %v820_v57 = vld [vmem:[%s1054_s1 + $0x198] ss:$28 sps:$4 sm:$0xff]   ;;  %v823_v58 = vld [vmem:[%s1054_s1 + $0x1a0] ss:$28 sps:$4 sm:$0xff]  }
  0x15   :  { %v86_v2 = vrot.slane %v81_v63, %v85_v61  ;;  %v94_v3 = vrot.slane %v81_v63, %v93_v62  ;;  %v90_v4 = vrot.slane %v81_v63, %v89_v0 }
  0x17   :  { %423 = vmatpush1.bf16.msra.mxu0 %v777_v23  ;;  %466 = vmatpush1.bf16.msra.mxu1 %v778_v24 }
  0x18   :  { %424 = vmatprep.subr.bf16.mxu0 %v779_v25  ;;  %467 = vmatprep.subr.bf16.mxu1 %v781_v26  ;;  %v101_v26 = vsub.s32 4, %v84_v60 }
  0x1b   :  { %425 = vmatpush1.bf16.msra.mxu0 %v783_v27  ;;  %468 = vmatpush1.bf16.msra.mxu1 %v784_v28  ;;  %v109_v27 = vsub.s32 6, %v84_v60  ;;  %v105_v28 = vsub.s32 5, %v84_v60 }
  0x1c   :  { %426 = vmatprep.subr.bf16.mxu0 %v785_v29  ;;  %469 = vmatprep.subr.bf16.mxu1 %v787_v30  ;;  %v102_v29 = vrot.slane %v81_v63, %v101_v26 }
  0x1d   :  { %v110_v30 = vrot.slane %v81_v63, %v109_v27 }
  0x1f   :  { %427 = vmatpush1.bf16.msra.mxu0 %v789_v31  ;;  %470 = vmatpush1.bf16.msra.mxu1 %v790_v32  ;;  %v106_v31 = vrot.slane %v81_v63, %v105_v28 }
  0x20   :  { %498 = vmatprep.subr.bf16.mxu0 %v794_v33  ;;  %720 = vmatprep.subr.bf16.mxu1 %v825_v37 }
  0x22   :  { %445 = vmatmul.mubr.bf16.vlgmr.msra.gmra.mrb[0].mxu0 %v951_v34  ;;  %488 = vmatmul.mubr.bf16.vlgmr.msra.gmra.mrb[0].mxu1 %v951_v34 }
  0x23   :  { %499 = vmatpush1.bf16.msra.mxu0 %v792_v35  ;;  %721 = vmatpush3.bf16.msra.mxu1 %v795_v36 }
  0x24   :  { %500 = vmatprep.subr.bf16.mxu0 %v798_v38  ;;  %722 = vmatprep.subr.bf16.mxu1 %v825_v37 }
  0x25   :  { %530 = vmatprep.mubr.bf16.mxu0 %v824_v1  ;;  %736 = vmatprep.mubr.msk.bf16.mxu1 %vm826_vm0, %v825_v37  ;;  %v97_v1 = vsub.s32 3, %v84_v60 }
  0x27   :  { %501 = vmatpush1.bf16.msra.mxu0 %v796_v39  ;;  %723 = vmatpush3.bf16.msra.mxu1 %v799_v40  ;;  %v98_v5 = vrot.slane %v81_v63, %v97_v1 }
  0x28   :  { %502 = vmatprep.subr.bf16.mxu0 %v802_v41  ;;  %724 = vmatprep.subr.bf16.mxu1 %v825_v37 }
  0x2b   :  { %503 = vmatpush1.bf16.msra.mxu0 %v800_v42  ;;  %725 = vmatpush3.bf16.msra.mxu1 %v803_v43 }
  0x2c   :  { %504 = vmatprep.subr.bf16.mxu0 %v806_v44  ;;  %726 = vmatprep.subr.bf16.mxu1 %v825_v37 }
  0x2f   :  { %505 = vmatpush1.bf16.msra.mxu0 %v804_v45  ;;  %727 = vmatpush3.bf16.msra.mxu1 %v807_v46 }
  0x30   :  { %506 = vmatprep.subr.bf16.mxu0 %v810_v47  ;;  %728 = vmatprep.subr.bf16.mxu1 %v825_v37 }
  0x33   :  { %507 = vmatpush1.bf16.msra.mxu0 %v808_v48  ;;  %729 = vmatpush3.bf16.msra.mxu1 %v811_v49 }
  0x34   :  { %508 = vmatprep.subr.bf16.mxu0 %v814_v50  ;;  %730 = vmatprep.subr.bf16.mxu1 %v825_v37 }
  0x37   :  { %509 = vmatpush1.bf16.msra.mxu0 %v812_v51  ;;  %731 = vmatpush3.bf16.msra.mxu1 %v815_v52 }
  0x38   :  { %510 = vmatprep.subr.bf16.mxu0 %v818_v53  ;;  %732 = vmatprep.subr.bf16.mxu1 %v825_v37 }
  0x3b   :  { %511 = vmatpush1.bf16.msra.mxu0 %v816_v54  ;;  %733 = vmatpush3.bf16.msra.mxu1 %v819_v55 }
  0x3c   :  { %512 = vmatprep.subr.bf16.mxu0 %v822_v56  ;;  %734 = vmatprep.subr.bf16.mxu1 %v825_v37 }
  0x3f   :  { %513 = vmatpush1.bf16.msra.mxu0 %v820_v57  ;;  %735 = vmatpush3.bf16.msra.mxu1 %v823_v58 }
  0x42   :  { %531 = vmatmul.mubr.bf16.vlgmr.msra.gmra.mrb[4].mxu0 %v951_v34  ;;  %737 = vmatmul.mubr.bf16.vlgmr.msra.gmra.mrb[4].mxu1 %v951_v34 }
  0xf5   :  { %v446_v6 = vpop.f32.mrb[0].mxu0  ;;  %v489_v7 = vpop.f32.mrb[0].mxu1 }
  0xf6   :  { %v447_v8 = vadd.f32 %v446_v6, %v86_v2  ;;  %v490_v9 = vadd.f32 %v489_v7, %v94_v3  ;;  %v448_v10 = vpop.f32.mrb[1].mxu0  ;;  %v491_v11 = vpop.f32.mrb[1].mxu1 }
  0xf7   :  { %v449_v12 = vadd.f32 %v448_v10, %v90_v4  ;;  %v492_v13 = vadd.f32 %v491_v11, %v98_v5  ;;  %v450_v14 = vpop.f32.mrb[2].mxu0  ;;  %v493_v15 = vpop.f32.mrb[2].mxu1 }
  0xf8   :  { %v451_v16 = vadd.f32 %v450_v14, %v86_v2  ;;  %v494_v17 = vadd.f32 %v493_v15, %v94_v3  ;;  %v452_v18 = vpop.f32.mrb[3].mxu0  ;;  %v495_v19 = vpop.f32.mrb[3].mxu1 }
  0xf9   :  { %v703_v20 = vpack.c.bf16 %v449_v12, %v447_v8  ;;  %v704_v21 = vpack.c.bf16 %v492_v13, %v490_v9  ;;  %v453_v22 = vadd.f32 %v452_v18, %v90_v4  ;;  %v496_v23 = vadd.f32 %v495_v19, %v98_v5 }
  0xfb   :  { %626 = vst [vmem:[%s1057_s3] sm:$0xff] %v703_v20  ;;  %627 = vst [vmem:[%s1057_s3 + $0x8] sm:$0xff] %v704_v21  ;;  %v707_v24 = vpack.c.bf16 %v453_v22, %v451_v16  ;;  %v708_v25 = vpack.c.bf16 %v496_v23, %v494_v17 }
  0xfd   :  { %630 = vst [vmem:[%s1057_s3 + $0x1c] sm:$0xff] %v707_v24  ;;  %631 = vst [vmem:[%s1057_s3 + $0x24] sm:$0xff] %v708_v25 }
 0x115   :  { %v532_v32 = vpop.f32.mrb[4].mxu0  ;;  %v575_v33 = vpop.f32.mrb[4].mxu1 }
 0x116   :  { %v533_v34 = vadd.f32 %v532_v32, %v102_v29  ;;  %v576_v35 = vadd.f32 %v575_v33, %v110_v30  ;;  %v534_v36 = vpop.f32.mrb[5].mxu0  ;;  %v738_v37 = vpop.f32.mrb[5].mxu1 }
 0x117   :  { %v535_v38 = vadd.f32 %v534_v36, %v106_v31  ;;  %v536_v39 = vpop.f32.mrb[6].mxu0  ;;  %v578_v40 = vpop.f32.mrb[6].mxu1 }
 0x118   :  { %v706_v41 = vpack.c.bf16 %v576_v35, %v576_v35  ;;  %v537_v42 = vadd.f32 %v536_v39, %v102_v29  ;;  %v579_v43 = vadd.f32 %v578_v40, %v110_v30  ;;  %v538_v44 = vpop.f32.mrb[7].mxu0  ;;  %v739_v45 = vpop.f32.mrb[7].mxu1 }
 0x119   :  { %v705_v46 = vpack.c.bf16 %v535_v38, %v533_v34  ;;  %v539_v47 = vadd.f32 %v538_v44, %v106_v31 }
 0x11a   :  { %629 = vst [vmem:[%s1057_s3 + $0x18] sm:$0xf] %v706_v41  ;;  %v710_v48 = vpack.c.bf16 %v579_v43, %v579_v43 }
 0x11b   :  { %628 = vst [vmem:[%s1057_s3 + $0x10] sm:$0xff] %v705_v46  ;;  %v709_v49 = vpack.c.bf16 %v539_v47, %v537_v42 }
 0x11c   :  { %633 = vst [vmem:[%s1057_s3 + $0x34] sm:$0xf] %v710_v48 }
 0x11d   :  { %632 = vst [vmem:[%s1057_s3 + $0x2c] sm:$0xff] %v709_v49 }

// kernel: _lambda_.4
= control target key start
LH: loop header
LB: loop body
LE: loop exit
PB: predicated region body
PF: predicated region fallthrough
CT: control target
= control target key end

     0   :  { %s621_s12 = smov 0   ;;  %s693_s0 = inlined_call_operand.vmem [shape: bf16[128,256], index: 0, kind: input, shape index: {}]   ;;  %s694_s1 = inlined_call_operand.vmem [shape: bf16[256,128], index: 1, kind: input, shape index: {}]   ;;  %s695_s2 = inlined_call_operand.vmem [shape: f32[1,128], index: 2, kind: input, shape index: {}]   ;;  %s696_s3 = inlined_call_operand.vmem [shape: bf16[128,128], index: 3, kind: output, shape index: {}]  }
   0x1 LB: > { %s466_s13 = sadd.s32 4294967295, %s599_s12   ;;  %p470_p0 = scmp.ge.s32.totalorder %s599_s12, 1  ;;  %s599_s12 = sphi %s621_s12, %s13_s12  }
   0x2   : > { %p139_p1 = scmp.lt.s32.totalorder %s599_s12, 5 }
   0x4   : > { %p140_p2 = pnand %p470_p0, %p139_p1 }
   0x5   : > { %v571_v0 = vld [vmem:[%s694_s1 + $0x40] sm:$0xff] (!%p140_p2)   ;;  %s471_s16 = sshll.u32 (!%p140_p2), %s466_s13, 2  ;;  %v573_v2 = vld [vmem:[%s694_s1 + $0x48] sm:$0xff] (!%p140_p2)   ;;  %v575_v4 = vld [vmem:[%s694_s1 + $0x50] sm:$0xff] (!%p140_p2)  }
   0x6   : > { %143 = sbr.rel (%p140_p2) target bundleno = 262 (0x106), region = 32  ;;  %v572_v1 = vld [vmem:[%s694_s1] sm:$0xff] (!%p140_p2)   ;;  %519 = vmatprep.subr.bf16.mxu0 (!%p140_p2), %v571_v0  ;;  %547 = vmatprep.subr.bf16.mxu1 (!%p140_p2), %v571_v0  ;;  %v574_v3 = vld [vmem:[%s694_s1 + $0x8] sm:$0xff] (!%p140_p2)   ;;  %p165_p3 = scmp.lt.s32.totalorder (!%p140_p2), %s471_s16, 15  ;;  %v576_v5 = vld [vmem:[%s694_s1 + $0x10] sm:$0xff] (!%p140_p2)  }
   0x7   : > { %520 = vmatpush3.bf16.msra.mxu0 (!%p140_p2), %v572_v1  ;;  %555 = vmatpush3.bf16.msra.mxu1 (!%p140_p2), %v572_v1  ;;  %v577_v6 = vld [vmem:[%s694_s1 + $0x58] sm:$0xff] (!%p140_p2)   ;;  %v579_v8 = vld [vmem:[%s694_s1 + $0x60] sm:$0xff] (!%p140_p2)   ;;  %v581_v10 = vld [vmem:[%s694_s1 + $0x68] sm:$0xff] (!%p140_p2)  }
   0x8   : > { %521 = vmatprep.subr.bf16.mxu0 (!%p140_p2), %v573_v2  ;;  %548 = vmatprep.subr.bf16.mxu1 (!%p140_p2), %v573_v2  ;;  %v578_v7 = vld [vmem:[%s694_s1 + $0x18] sm:$0xff] (!%p140_p2)   ;;  %v580_v9 = vld [vmem:[%s694_s1 + $0x20] sm:$0xff] (!%p140_p2)   ;;  %v582_v13 = vld [vmem:[%s694_s1 + $0x28] sm:$0xff] (!%p140_p2)  }
   0x9   : > { %v583_v14 = vld [vmem:[%s694_s1 + $0x70] sm:$0xff] (!%p140_p2)   ;;  %v585_v16 = vld [vmem:[%s694_s1 + $0x78] sm:$0xff] (!%p140_p2)   ;;  %v476_v22 = vld [vmem:[%s695_s2] ss:$0 sm:$0xff] (!%p140_p2) }
   0xa   : > { %v584_v15 = vld [vmem:[%s694_s1 + $0x30] sm:$0xff] (!%p140_p2)   ;;  %v586_v17 = vld [vmem:[%s694_s1 + $0x38] sm:$0xff] (!%p140_p2)  }
   0xb   : > { %522 = vmatpush3.bf16.msra.mxu0 (!%p140_p2), %v574_v3  ;;  %556 = vmatpush3.bf16.msra.mxu1 (!%p140_p2), %v574_v3 }
   0xc   : > { %523 = vmatprep.subr.bf16.mxu0 (!%p140_p2), %v575_v4  ;;  %549 = vmatprep.subr.bf16.mxu1 (!%p140_p2), %v575_v4 }
   0xd   : > { %s698_s16 = smov (!%p165_p3, %s471_s16), 15 }
   0xe   : > { %s503_s4 = sshll.u32 %s698_s16, 3  ;;  %s475_s28 = sshll.u32 %s698_s16, 2 }
   0xf   : > { %524 = vmatpush3.bf16.msra.mxu0 %v576_v5  ;;  %557 = vmatpush3.bf16.msra.mxu1 %v576_v5  ;;  %s169_s9 = scalar_lea.vmem %s693_s0, %s503_s4  ;;  %s175_s4 = scalar_lea.vmem %s696_s3, %s475_s28 }
  0x10   : > { %525 = vmatprep.subr.bf16.mxu0 %v577_v6  ;;  %550 = vmatprep.subr.bf16.mxu1 %v577_v6  ;;  %v589_v11 = vld [vmem:[%s169_s9 + $0x4] ss:$8 sps:$4 sm:$0xff]   ;;  %v592_v12 = vld [vmem:[%s169_s9 + $0x14] ss:$8 sps:$4 sm:$0xff]   ;;  %v587_v18 = vld [vmem:[%s169_s9] ss:$8 sps:$4 sm:$0xff]  }
  0x11   : > { %369 = vmatprep.mubr.bf16.mxu0 %v589_v11  ;;  %377 = vmatprep.mubr.bf16.mxu1 %v592_v12  ;;  %v590_v19 = vld [vmem:[%s169_s9 + $0x10] ss:$8 sps:$4 sm:$0xff]  }
  0x13   : > { %526 = vmatpush3.bf16.msra.mxu0 %v578_v7  ;;  %558 = vmatpush3.bf16.msra.mxu1 %v578_v7 }
  0x14   : > { %527 = vmatprep.subr.bf16.mxu0 %v579_v8  ;;  %551 = vmatprep.subr.bf16.mxu1 %v579_v8 }
  0x17   : > { %528 = vmatpush3.bf16.msra.mxu0 %v580_v9  ;;  %559 = vmatpush3.bf16.msra.mxu1 %v580_v9 }
  0x18   : > { %529 = vmatprep.subr.bf16.mxu0 %v581_v10  ;;  %552 = vmatprep.subr.bf16.mxu1 %v581_v10 }
  0x1b   : > { %530 = vmatpush3.bf16.msra.mxu0 %v582_v13  ;;  %560 = vmatpush3.bf16.msra.mxu1 %v582_v13 }
  0x1c   : > { %531 = vmatprep.subr.bf16.mxu0 %v583_v14  ;;  %553 = vmatprep.subr.bf16.mxu1 %v583_v14 }
  0x1f   : > { %532 = vmatpush3.bf16.msra.mxu0 %v584_v15  ;;  %561 = vmatpush3.bf16.msra.mxu1 %v584_v15 }
  0x20   : > { %533 = vmatprep.subr.bf16.mxu0 %v585_v16  ;;  %554 = vmatprep.subr.bf16.mxu1 %v585_v16 }
  0x23   : > { %534 = vmatpush3.bf16.msra.mxu0 %v586_v17  ;;  %562 = vmatpush3.bf16.msra.mxu1 %v586_v17 }
  0x26   : > { %370 = vmatmul.mubr.bf16.vlgmr.msra.gmra.mrb[0].mxu0 %v587_v18  ;;  %378 = vmatmul.mubr.bf16.vlgmr.msra.gmra.mrb[0].mxu1 %v590_v19 }
  0xf9   : > { %v535_v20 = vpop.f32.mrb[0].mxu0  ;;  %v541_v21 = vpop.f32.mrb[0].mxu1 }
  0xfa   : > { %v536_v23 = vpop.f32.mrb[1].mxu0  ;;  %v542_v24 = vpop.f32.mrb[1].mxu1 }
  0xfb   : > { %v537_v25 = vadd.f32 %v536_v23, %v535_v20  ;;  %v543_v26 = vadd.f32 %v542_v24, %v541_v21  ;;  %v538_v27 = vpop.f32.mrb[2].mxu0  ;;  %v544_v28 = vpop.f32.mrb[2].mxu1 }
  0xfc   : > { %v539_v29 = vpop.f32.mrb[3].mxu0  ;;  %v545_v30 = vpop.f32.mrb[3].mxu1 }
  0xfd   : > { %v372_v31 = vadd.f32 %v537_v25, %v476_v22  ;;  %v380_v32 = vadd.f32 %v543_v26, %v476_v22  ;;  %v540_v33 = vadd.f32 %v539_v29, %v538_v27  ;;  %v546_v34 = vadd.f32 %v545_v30, %v544_v28 }
  0xff   : > { %v375_v35 = vadd.f32 %v540_v33, %v476_v22  ;;  %v383_v36 = vadd.f32 %v546_v34, %v476_v22  ;;  %v386_v37 = vmax.f32 %v372_v31, 0.0  ;;  %v388_v38 = vmax.f32 %v380_v32, 0.0 }
 0x101   : > { %v387_v39 = vmax.f32 %v375_v35, 0.0  ;;  %v389_v40 = vmax.f32 %v383_v36, 0.0 }
 0x103   : > { %v511_v41 = vpack.c.bf16 %v387_v39, %v386_v37  ;;  %v516_v42 = vpack.c.bf16 %v389_v40, %v388_v38 }
 0x105   : > { %512 = vst [vmem:[%s175_s4] sm:$0xff] %v511_v41   ;;  %518 = vst [vmem:[%s175_s4 + $0x8] sm:$0xff] %v516_v42  }
 0x106 PF: > { %s13_s12 = sadd.s32 1, %s599_s12  }
 0x107   : > { %p10_p4 = scmp.ge.s32.totalorder %s13_s12, 6  }
 0x109   :  { %12 = sbr.rel (!%p10_p4) target bundleno = 1 (0x1), region = 62 }

// kernel: _lambda_.5
= control target key start
LH: loop header
LB: loop body
LE: loop exit
PB: predicated region body
PF: predicated region fallthrough
CT: control target
= control target key end

     0   :  { %s658_s12 = smov 0   ;;  %s777_s0 = inlined_call_operand.vmem [shape: bf16[448,128], index: 0, kind: input, shape index: {}]   ;;  %s778_s1 = inlined_call_operand.vmem [shape: bf16[128,128], index: 1, kind: input, shape index: {}]   ;;  %s779_s2 = inlined_call_operand.vmem [shape: f32[1,128], index: 2, kind: input, shape index: {}]   ;;  %s780_s3 = inlined_call_operand.vmem [shape: f32[448,128], index: 3, kind: output, shape index: {}]  }
   0x1 LB: > { %s475_s13 = sadd.s32 4294967295, %s634_s12   ;;  %p479_p0 = scmp.ge.s32.totalorder %s634_s12, 1  ;;  %s634_s12 = sphi %s658_s12, %s13_s12  }
   0x2   : > { %p138_p1 = scmp.lt.s32.totalorder %s634_s12, 5 }
   0x4   : > { %p139_p2 = pnand %p479_p0, %p138_p1 }
   0x5   : > { %v585_v0 = vld [vmem:[%s778_s1] sm:$0xff] (!%p139_p2)   ;;  %v636_v1 = vmov (!%p139_p2), 0.0   ;;  %v586_v2 = vld [vmem:[%s778_s1 + $0x8] sm:$0xff] (!%p139_p2)   ;;  %s162_s18 = smul.u32 (!%p139_p2), 14, %s475_s13  ;;  %vm637_vm0 = vmmov (!%p139_p2), 0   ;;  %v587_v3 = vld [vmem:[%s778_s1 + $0x10] sm:$0xff] (!%p139_p2)  }
   0x6   : > { %142 = sbr.rel (%p139_p2) target bundleno = 290 (0x122), region = 32  ;;  %515 = vmatprep.subr.bf16.mxu0 (!%p139_p2), %v636_v1  ;;  %559 = vmatprep.subr.bf16.mxu1 (!%p139_p2), %v636_v1  ;;  %v588_v4 = vld [vmem:[%s778_s1 + $0x18] sm:$0xff] (!%p139_p2)   ;;  %v589_v5 = vld [vmem:[%s778_s1 + $0x20] sm:$0xff] (!%p139_p2)   ;;  %v590_v6 = vld [vmem:[%s778_s1 + $0x28] sm:$0xff] (!%p139_p2)  }
   0x7   : > { %516 = vmatpush3.bf16.msra.mxu0 (!%p139_p2), %v585_v0  ;;  %567 = vmatpush3.bf16.msra.mxu1 (!%p139_p2), %v585_v0  ;;  %p163_p3 = scmp.lt.s32.totalorder (!%p139_p2), %s162_s18, 55  ;;  %v591_v7 = vld [vmem:[%s778_s1 + $0x30] sm:$0xff] (!%p139_p2)   ;;  %v592_v8 = vld [vmem:[%s778_s1 + $0x38] sm:$0xff] (!%p139_p2)   ;;  %v738_v16 = vld [vmem:[%s779_s2] ss:$0 sm:$0xff] (!%p139_p2) }
   0x8   : > { %517 = vmatprep.subr.bf16.mxu0 (!%p139_p2), %v636_v1  ;;  %560 = vmatprep.subr.bf16.mxu1 (!%p139_p2), %v636_v1 }
   0x9   : > { %531 = vmatprep.mubr.msk.bf16.mxu0 (!%p139_p2), %vm637_vm0, %v636_v1  ;;  %547 = vmatprep.mubr.msk.bf16.mxu1 (!%p139_p2), %vm637_vm0, %v636_v1 }
   0xb   : > { %518 = vmatpush3.bf16.msra.mxu0 (!%p139_p2), %v586_v2  ;;  %568 = vmatpush3.bf16.msra.mxu1 (!%p139_p2), %v586_v2 }
   0xc   : > { %519 = vmatprep.subr.bf16.mxu0 (!%p139_p2), %v636_v1  ;;  %561 = vmatprep.subr.bf16.mxu1 (!%p139_p2), %v636_v1 }
   0xd   : > { %s782_s18 = smov (!%p163_p3, %s162_s18), 55 }
   0xe   : > { %s480_s21 = sshll.u32 %s782_s18, 2  ;;  %s481_s10 = sshll.u32 %s782_s18, 3 }
   0xf   : > { %s691_s24 = scalar_lea.vmem %s777_s0, %s480_s21  ;;  %520 = vmatpush3.bf16.msra.mxu0 %v587_v3  ;;  %569 = vmatpush3.bf16.msra.mxu1 %v587_v3  ;;  %s750_s14 = scalar_lea.vmem %s780_s3, %s481_s10 }
  0x10   : > { %521 = vmatprep.subr.bf16.mxu0 %v636_v1  ;;  %562 = vmatprep.subr.bf16.mxu1 %v636_v1  ;;  %v593_v9 = vld [vmem:[%s691_s24] sm:$0xff]   ;;  %v595_v11 = vld [vmem:[%s691_s24 + $0x8] sm:$0xff]   ;;  %v597_v13 = vld [vmem:[%s691_s24 + $0x10] sm:$0xff]  }
  0x11   : > { %v594_v10 = vld [vmem:[%s691_s24 + $0x20] sm:$0xff]   ;;  %v596_v12 = vld [vmem:[%s691_s24 + $0x28] sm:$0xff]   ;;  %v598_v14 = vld [vmem:[%s691_s24 + $0x30] sm:$0xff]  }
  0x12   : > { %v599_v15 = vld [vmem:[%s691_s24 + $0x18] sm:$0xff]  }
  0x13   : > { %522 = vmatpush3.bf16.msra.mxu0 %v588_v4  ;;  %570 = vmatpush3.bf16.msra.mxu1 %v588_v4 }
  0x14   : > { %523 = vmatprep.subr.bf16.mxu0 %v636_v1  ;;  %563 = vmatprep.subr.bf16.mxu1 %v636_v1 }
  0x17   : > { %524 = vmatpush3.bf16.msra.mxu0 %v589_v5  ;;  %571 = vmatpush3.bf16.msra.mxu1 %v589_v5 }
  0x18   : > { %525 = vmatprep.subr.bf16.mxu0 %v636_v1  ;;  %564 = vmatprep.subr.bf16.mxu1 %v636_v1 }
  0x1b   : > { %526 = vmatpush3.bf16.msra.mxu0 %v590_v6  ;;  %572 = vmatpush3.bf16.msra.mxu1 %v590_v6 }
  0x1c   : > { %527 = vmatprep.subr.bf16.mxu0 %v636_v1  ;;  %565 = vmatprep.subr.bf16.mxu1 %v636_v1 }
  0x1f   : > { %528 = vmatpush3.bf16.msra.mxu0 %v591_v7  ;;  %573 = vmatpush3.bf16.msra.mxu1 %v591_v7 }
  0x20   : > { %529 = vmatprep.subr.bf16.mxu0 %v636_v1  ;;  %566 = vmatprep.subr.bf16.mxu1 %v636_v1 }
  0x23   : > { %530 = vmatpush3.bf16.msra.mxu0 %v592_v8  ;;  %574 = vmatpush3.bf16.msra.mxu1 %v592_v8 }
  0x26   : > { %532 = vmatmul.mubr.bf16.vlgmr.msra.gmra.mrb[0].mxu0 %v593_v9  ;;  %548 = vmatmul.mubr.bf16.vlgmr.msra.gmra.mrb[0].mxu1 %v594_v10 }
  0x27   : > { %535 = vmatprep.mubr.msk.bf16.mxu0 %vm637_vm0, %v636_v1  ;;  %551 = vmatprep.mubr.msk.bf16.mxu1 %vm637_vm0, %v636_v1 }
  0x2e   : > { %536 = vmatmul.mubr.bf16.gmra.mrb[4].mxu0 %v595_v11  ;;  %552 = vmatmul.mubr.bf16.gmra.mrb[4].mxu1 %v596_v12 }
  0x2f   : > { %539 = vmatprep.mubr.msk.bf16.mxu0 %vm637_vm0, %v636_v1  ;;  %555 = vmatprep.mubr.msk.bf16.mxu1 %vm637_vm0, %v636_v1 }
  0x36   : > { %540 = vmatmul.mubr.bf16.gmra.mrb[8].mxu0 %v597_v13  ;;  %556 = vmatmul.mubr.bf16.gmra.mrb[8].mxu1 %v598_v14 }
  0x37   : > { %543 = vmatprep.mubr.msk.bf16.mxu0 %vm637_vm0, %v636_v1 }
  0x3e   : > { %544 = vmatmul.mubr.bf16.gmra.mrb[12].mxu0 %v599_v15 }
  0xf9   : > { %v336_v17 = vpop.f32.mrb[0].mxu0  ;;  %v368_v18 = vpop.f32.mrb[0].mxu1 }
  0xfa   : > { %v337_v19 = vadd.f32 %v738_v16, %v336_v17  ;;  %v533_v20 = vpop.f32.mrb[1].mxu0  ;;  %v369_v21 = vadd.f32 %v738_v16, %v368_v18  ;;  %v549_v22 = vpop.f32.mrb[1].mxu1 }
  0xfb   : > { %v339_v23 = vpop.f32.mrb[2].mxu0  ;;  %v371_v24 = vpop.f32.mrb[2].mxu1 }
  0xfc   : > { %600 = vtanh.f32 %v337_v19  ;;  %v340_v25 = vadd.f32 %v738_v16, %v339_v23  ;;  %v534_v26 = vpop.f32.mrb[3].mxu0  ;;  %v372_v27 = vadd.f32 %v738_v16, %v371_v24  ;;  %v550_v28 = vpop.f32.mrb[3].mxu1 }
  0xfd   : > { %602 = vtanh.f32 %v369_v21 }
  0xfe   : > { %604 = vtanh.f32 %v340_v25 }
  0xff   : > { %606 = vtanh.f32 %v372_v27 }
 0x101   : > { %v344_v29 = vpop.f32.mrb[4].mxu0  ;;  %v376_v30 = vpop.f32.mrb[4].mxu1 }
 0x102   : > { %v345_v31 = vadd.f32 %v738_v16, %v344_v29  ;;  %v537_v32 = vpop.f32.mrb[5].mxu0  ;;  %v377_v33 = vadd.f32 %v738_v16, %v376_v30  ;;  %v553_v34 = vpop.f32.mrb[5].mxu1 }
 0x103   : > { %v347_v35 = vpop.f32.mrb[6].mxu0  ;;  %v379_v36 = vpop.f32.mrb[6].mxu1 }
 0x104   : > { %608 = vtanh.f32 %v345_v31  ;;  %v348_v37 = vadd.f32 %v738_v16, %v347_v35  ;;  %v538_v38 = vpop.f32.mrb[7].mxu0  ;;  %v380_v39 = vadd.f32 %v738_v16, %v379_v36  ;;  %v554_v40 = vpop.f32.mrb[7].mxu1 }
 0x105   : > { %610 = vtanh.f32 %v377_v33 }
 0x106   : > { %v601_v41 = vpop.eup %600  ;;  %612 = vtanh.f32 %v348_v37 }
 0x107   : > { %v603_v42 = vpop.eup %602  ;;  %405 = vst [vmem:[%s750_s14] sm:$0xff] %v601_v41  ;;  %614 = vtanh.f32 %v380_v39 }
 0x108   : > { %v605_v43 = vpop.eup %604  ;;  %413 = vst [vmem:[%s750_s14 + $0x40] sm:$0xff] %v603_v42 }
 0x109   : > { %v607_v44 = vpop.eup %606  ;;  %406 = vst [vmem:[%s750_s14 + $0x8] sm:$0xff] %v605_v43  ;;  %v352_v45 = vpop.f32.mrb[8].mxu0 }
 0x10a   : > { %v384_v46 = vpop.f32.mrb[8].mxu1  ;;  %414 = vst [vmem:[%s750_s14 + $0x48] sm:$0xff] %v607_v44  ;;  %v353_v47 = vadd.f32 %v738_v16, %v352_v45  ;;  %v541_v48 = vpop.f32.mrb[9].mxu0 }
 0x10b   : > { %v385_v49 = vadd.f32 %v738_v16, %v384_v46  ;;  %v557_v50 = vpop.f32.mrb[9].mxu1  ;;  %v355_v51 = vpop.f32.mrb[10].mxu0 }
 0x10c   : > { %v387_v52 = vpop.f32.mrb[10].mxu1  ;;  %616 = vtanh.f32 %v353_v47  ;;  %v356_v53 = vadd.f32 %v738_v16, %v355_v51  ;;  %v542_v54 = vpop.f32.mrb[11].mxu0 }
 0x10d   : > { %v388_v55 = vadd.f32 %v738_v16, %v387_v52  ;;  %v558_v56 = vpop.f32.mrb[11].mxu1  ;;  %618 = vtanh.f32 %v385_v49 }
 0x10e   : > { %v609_v57 = vpop.eup %608  ;;  %620 = vtanh.f32 %v356_v53 }
 0x10f   : > { %v611_v58 = vpop.eup %610  ;;  %407 = vst [vmem:[%s750_s14 + $0x10] sm:$0xff] %v609_v57  ;;  %622 = vtanh.f32 %v388_v55 }
 0x110   : > { %v613_v59 = vpop.eup %612  ;;  %415 = vst [vmem:[%s750_s14 + $0x50] sm:$0xff] %v611_v58 }
 0x111   : > { %v615_v60 = vpop.eup %614  ;;  %408 = vst [vmem:[%s750_s14 + $0x18] sm:$0xff] %v613_v59  ;;  %v360_v61 = vpop.f32.mrb[12].mxu0 }
 0x112   : > { %416 = vst [vmem:[%s750_s14 + $0x58] sm:$0xff] %v615_v60  ;;  %v361_v62 = vadd.f32 %v738_v16, %v360_v61  ;;  %v545_v63 = vpop.f32.mrb[13].mxu0 }
 0x113   : > { %v363_v0 = vpop.f32.mrb[14].mxu0 }
 0x114   : > { %624 = vtanh.f32 %v361_v62  ;;  %v364_v1 = vadd.f32 %v738_v16, %v363_v0  ;;  %v546_v2 = vpop.f32.mrb[15].mxu0 }
 0x116   : > { %v617_v3 = vpop.eup %616  ;;  %626 = vtanh.f32 %v364_v1 }
 0x117   : > { %v619_v4 = vpop.eup %618  ;;  %409 = vst [vmem:[%s750_s14 + $0x20] sm:$0xff] %v617_v3 }
 0x118   : > { %v621_v5 = vpop.eup %620  ;;  %417 = vst [vmem:[%s750_s14 + $0x60] sm:$0xff] %v619_v4 }
 0x119   : > { %v623_v6 = vpop.eup %622  ;;  %410 = vst [vmem:[%s750_s14 + $0x28] sm:$0xff] %v621_v5 }
 0x11a   : > { %418 = vst [vmem:[%s750_s14 + $0x68] sm:$0xff] %v623_v6 }
 0x11e   : > { %v625_v7 = vpop.eup %624 }
 0x11f   : > { %411 = vst [vmem:[%s750_s14 + $0x30] sm:$0xff] %v625_v7 }
 0x120   : > { %v627_v8 = vpop.eup %626 }
 0x121   : > { %412 = vst [vmem:[%s750_s14 + $0x38] sm:$0xff] %v627_v8 }
 0x122 PF: > { %s13_s12 = sadd.s32 1, %s634_s12  }
 0x123   : > { %p10_p4 = scmp.ge.s32.totalorder %s13_s12, 6  }
 0x125   :  { %12 = sbr.rel (!%p10_p4) target bundleno = 1 (0x1), region = 62 }

</bundles_post_ra>
